<compile_context>
chip_gen: v7x
topology: tpu7x:2x2x1
jax: 0.10.0
libtpu: 0.0.40
codegen_flags: <defaults>
</compile_context>

<pallas_src>
import jax
import jax.numpy as jnp
import numpy as np
from jax.experimental import pallas as pl
from jax.experimental.pallas import tpu as pltpu


def _tgcn_gc_kernel(wind_ref, windmap_ref, bias_ref, w2t_ref, fh_ref, w1t_ref, b1_ref,
                    out_ref):
    # Per grid step: one batch element.
    # wind_ref: (N, 1)    windmap_ref / bias_ref / w2t_ref: (N, N)
    # fh_ref:   (N, H+1)  w1t_ref: (H+1, OUT)  b1_ref: (1, OUT)  out_ref: (N, OUT)

    # --- wind-direction attention ---
    direction = jnp.abs(windmap_ref[...] - wind_ref[...])          # (N, N)
    direction = jnp.where(direction > 360.0, 180.0, direction)     # torch: direction[>360]=180
    d1 = jnp.cos(direction * (jnp.pi / 180.0))
    d1 = jnp.maximum(d1, 0.0)

    # --- a = relu(liner2(direction1) + liner3(adj)) ---
    # liner3(adj) + b3 + b2 is batch-invariant and precomputed in the wrapper (bias_ref).
    a = jnp.dot(d1, w2t_ref[...], preferred_element_type=jnp.float32) + bias_ref[...]
    a = jnp.maximum(a, 0.0)                                          # (N, N)

    # --- normalized Laplacian with self-loop, folded into row scalings ---
    # TODO(synk): calculate_laplacian_with_self_loop2 is not provided in the source;
    # assuming the standard symmetric normalization D^-1/2 (a + I) D^-1/2.
    row_sum = jnp.sum(a, axis=-1, keepdims=True) + 1.0               # >= 1 post-ReLU
    d_inv = jax.lax.rsqrt(row_sum)                                   # guard-free rsqrt
    x = d_inv * fh_ref[...]                                          # (N, H+1)
    ac = d_inv * (jnp.dot(a, x, preferred_element_type=jnp.float32) + x)

    # --- output linear (liner1) ---
    out = jnp.dot(ac, w1t_ref[...], preferred_element_type=jnp.float32) + b1_ref[...]
    out_ref[...] = out.astype(out_ref.dtype)


def tgcn_graph_convolution(inputs, hidden_state, params):
    adj = params["adj"].astype(jnp.float32)
    windmap = params["windmap"].astype(jnp.float32)
    w1 = params["w1"].astype(jnp.float32)
    b1 = params["b1"].astype(jnp.float32)
    w2 = params["w2"].astype(jnp.float32)
    b2 = params["b2"].astype(jnp.float32)
    w3 = params["w3"].astype(jnp.float32)
    b3 = params["b3"].astype(jnp.float32)

    B, _, N = inputs.shape
    OUT, Hp1 = w1.shape
    H = Hp1 - 1

    inputs = inputs.astype(jnp.float32)
    hidden_state = hidden_state.astype(jnp.float32)

    # Cheap XLA prep outside the kernel.  No batch-tiled copies of batch-invariant data.
    wind = (inputs[:, 2, :] * 360.0)[..., None]                                  # (B, N, 1)
    fh = jnp.concatenate(
        [inputs[:, 0, :][..., None], hidden_state.reshape(B, N, H)], axis=2)     # (B, N, H+1)
    bias_map = adj @ w3.T + b3[None, :] + b2[None, :]                            # (N, N)
    w2t = w2.T                                                                   # (N, N)
    w1t = w1.T                                                                   # (H+1, OUT)
    b1r = b1.reshape(1, OUT)

    # VMEM budget: resident weights + double-buffered per-step blocks + live temps.
    work_bytes = 4 * (3 * N * N + Hp1 * OUT + OUT
                      + 2 * (N + N * Hp1 + N * OUT)
                      + 6 * N * N + 4 * N * Hp1)
    vmem_limit = int(min(64 * 1024 * 1024, max(32 * 1024 * 1024, 2 * work_bytes)))

    cost = pl.CostEstimate(
        flops=2 * B * N * N * N + 2 * B * N * N * Hp1 + 2 * B * N * Hp1 * OUT,
        transcendentals=B * N * N + B * N,
        bytes_accessed=4 * (B * N + B * N * Hp1 + B * N * OUT
                            + 3 * N * N + Hp1 * OUT + OUT),
    )

    per_step = lambda b: (b, 0, 0)   # per-batch blocks (pipelined / double-buffered)
    shared2d = lambda b: (0, 0)      # batch-invariant blocks (VMEM-resident)

    out3d = pl.pallas_call(
        _tgcn_gc_kernel,
        out_shape=jax.ShapeDtypeStruct((B, N, OUT), jnp.float32),
        grid=(B,),
        in_specs=[
            pl.BlockSpec((None, N, 1), per_step),       # wind (per-batch)
            pl.BlockSpec((N, N), shared2d),             # windmap (resident)
            pl.BlockSpec((N, N), shared2d),             # adj@W3^T + b3 + b2 (resident)
            pl.BlockSpec((N, N), shared2d),             # W2^T (resident)
            pl.BlockSpec((None, N, Hp1), per_step),     # [feat, hidden] (per-batch)
            pl.BlockSpec((Hp1, OUT), shared2d),         # W1^T (resident)
            pl.BlockSpec((1, OUT), shared2d),           # b1 (resident)
        ],
        out_specs=pl.BlockSpec((None, N, OUT), per_step),
        compiler_params=pltpu.CompilerParams(
            dimension_semantics=("parallel",),
            vmem_limit_bytes=vmem_limit,
        ),
        cost_estimate=cost,
    )(wind, windmap, bias_map, w2t, fh, w1t, b1r)

    # Row-major (B, N, OUT) -> (B, N*OUT) flatten is free (matches torch .reshape).
    return out3d.reshape(B, N * OUT)


def reference(inputs, hidden_state, params):
    """Pure-JAX reference mirroring the PyTorch forward."""
    adj, windmap = params["adj"], params["windmap"]
    w1, b1, w2, b2, w3, b3 = (params[k] for k in ("w1", "b1", "w2", "b2", "w3", "b3"))
    B, _, N = inputs.shape
    OUT, Hp1 = w1.shape
    H = Hp1 - 1
    wind_now = inputs[:, 2, :] * 360.0
    direction = jnp.abs(windmap[None] - wind_now[:, :, None])
    direction = jnp.where(direction > 360.0, 180.0, direction)
    d1 = jnp.cos(direction * jnp.pi / 180.0)
    d1 = jnp.where(d1 < 0.0, 0.0, d1)
    a = d1 @ w2.T + b2 + (adj @ w3.T + b3)[None]
    a = jnp.maximum(a, 0.0)
    eye = jnp.eye(N, dtype=a.dtype)
    a_sl = a + eye
    rs = a_sl.sum(-1)
    dis = jnp.where(rs > 0, rs ** -0.5, 0.0)
    lap = dis[:, :, None] * a_sl * dis[:, None, :]
    feat = inputs[:, 0, :][..., None]
    h = hidden_state.reshape(B, N, H)
    concat = jnp.concatenate([feat, h], axis=2)
    ac = lap @ concat
    out = ac @ w1.T + b1
    return out.reshape(B, N * OUT)


if __name__ == "__main__":
    B, C, N, H, OUT = 2, 4, 16, 32, 8   # batch, input channels, nodes, gru units, output dim
    key = jax.random.PRNGKey(0)
    keys = jax.random.split(key, 10)

    adj = jax.random.uniform(keys[0], (N, N), jnp.float32)                  # adjacency
    windmap = jax.random.uniform(keys[1], (N, N), jnp.float32) * 360.0      # wind direction map
    w1 = jax.random.uniform(keys[2], (OUT, H + 1), jnp.float32, -0.1, 0.1)  # liner1
    b1 = jax.random.uniform(keys[3], (OUT,), jnp.float32, -0.1, 0.1)
    w2 = jax.random.uniform(keys[4], (N, N), jnp.float32, -0.1, 0.1)        # liner2
    b2 = jax.random.uniform(keys[5], (N,), jnp.float32, -0.1, 0.1)
    w3 = jax.random.uniform(keys[6], (N, N), jnp.float32, -0.1, 0.1)        # liner3
    b3 = jax.random.uniform(keys[7], (N,), jnp.float32, -0.1, 0.1)

    inputs = jax.random.uniform(keys[8], (B, C, N), jnp.float32)            # (B, C, N)
    hidden = jax.random.uniform(keys[9], (B, N * H), jnp.float32)

    params = dict(adj=adj, windmap=windmap, w1=w1, b1=b1, w2=w2, b2=b2, w3=w3, b3=b3)

    out = tgcn_graph_convolution(inputs, hidden, params)
    out = jax.block_until_ready(out)

    ref = reference(inputs, hidden, params)
    assert out.shape == (B, N * OUT)
    np.testing.assert_allclose(np.asarray(out), np.asarray(ref), atol=1e-4, rtol=1e-4)
    print("KERNEL_OK")
</pallas_src>

<mosaic_0001>
module attributes {stable_mosaic.version = 11 : i64} {
  func.func @_tgcn_gc_kernel(%arg0: i32, %arg1: memref<1x16x1xf32, #tpu.memory_space<vmem>>, %arg2: memref<16x16xf32, #tpu.memory_space<vmem>>, %arg3: memref<16x16xf32, #tpu.memory_space<vmem>>, %arg4: memref<16x16xf32, #tpu.memory_space<vmem>>, %arg5: memref<1x16x33xf32, #tpu.memory_space<vmem>>, %arg6: memref<33x8xf32, #tpu.memory_space<vmem>>, %arg7: memref<1x8xf32, #tpu.memory_space<vmem>>, %arg8: memref<1x16x8xf32, #tpu.memory_space<vmem>>) attributes {dimension_semantics = [#tpu.dimension_semantics<parallel>], iteration_bounds = array<i64: 2>, scalar_prefetch = 0 : i64, scratch_operands = 0 : i64, tpu.core_type = #tpu.core_type<tc>, window_params = [{transform_indices = @transform_0, window_bounds = array<i64: 1, 16, 1>}, {pipeline_mode = #tpu.pipeline_mode<synchronous>, transform_indices = @transform_1, window_bounds = array<i64: 16, 16>}, {pipeline_mode = #tpu.pipeline_mode<synchronous>, transform_indices = @transform_2, window_bounds = array<i64: 16, 16>}, {pipeline_mode = #tpu.pipeline_mode<synchronous>, transform_indices = @transform_3, window_bounds = array<i64: 16, 16>}, {transform_indices = @transform_4, window_bounds = array<i64: 1, 16, 33>}, {pipeline_mode = #tpu.pipeline_mode<synchronous>, transform_indices = @transform_5, window_bounds = array<i64: 33, 8>}, {pipeline_mode = #tpu.pipeline_mode<synchronous>, transform_indices = @transform_6, window_bounds = array<i64: 1, 8>}, {transform_indices = @transform_7, window_bounds = array<i64: 1, 16, 8>}]} {
    %c0 = arith.constant 0 : index
    %c0_0 = arith.constant 0 : index
    %0 = vector.load %arg2[%c0, %c0_0] : memref<16x16xf32, #tpu.memory_space<vmem>>, vector<16x16xf32>
    %c0_1 = arith.constant 0 : index
    %c0_2 = arith.constant 0 : index
    %c0_3 = arith.constant 0 : index
    %1 = vector.load %arg1[%c0_1, %c0_2, %c0_3] : memref<1x16x1xf32, #tpu.memory_space<vmem>>, vector<1x16x1xf32>
    %2 = vector.shape_cast %1 : vector<1x16x1xf32> to vector<16x1xf32>
    %3 = vector.broadcast %2 : vector<16x1xf32> to vector<16x16xf32>
    %4 = arith.subf %0, %3 : vector<16x16xf32>
    %5 = math.absf %4 : vector<16x16xf32>
    %cst = arith.constant 3.600000e+02 : f32
    %6 = vector.broadcast %cst : f32 to vector<16x16xf32>
    %7 = arith.cmpf ogt, %5, %6 : vector<16x16xf32>
    %cst_4 = arith.constant 1.800000e+02 : f32
    %8 = vector.broadcast %cst_4 : f32 to vector<16x16xf32>
    %9 = arith.select %7, %8, %5 : vector<16x16xi1>, vector<16x16xf32>
    %cst_5 = arith.constant 0.0174532924 : f32
    %10 = vector.broadcast %cst_5 : f32 to vector<16x16xf32>
    %11 = arith.mulf %9, %10 : vector<16x16xf32>
    %12 = math.cos %11 : vector<16x16xf32>
    %cst_6 = arith.constant 0.000000e+00 : f32
    %13 = vector.broadcast %cst_6 : f32 to vector<16x16xf32>
    %14 = arith.maximumf %12, %13 : vector<16x16xf32>
    %c0_7 = arith.constant 0 : index
    %c0_8 = arith.constant 0 : index
    %15 = vector.load %arg4[%c0_7, %c0_8] : memref<16x16xf32, #tpu.memory_space<vmem>>, vector<16x16xf32>
    %cst_9 = arith.constant dense<0.000000e+00> : vector<16x16xf32>
    %16 = tpu.matmul %14, %15, %cst_9 {dimension_numbers = #tpu.dot_dimension_numbers<[1], [0], [0], [1], [0, 0, 1, 1], [], []>} : vector<16x16xf32>, vector<16x16xf32>, vector<16x16xf32> -> vector<16x16xf32>
    %c0_10 = arith.constant 0 : index
    %c0_11 = arith.constant 0 : index
    %17 = vector.load %arg3[%c0_10, %c0_11] : memref<16x16xf32, #tpu.memory_space<vmem>>, vector<16x16xf32>
    %18 = arith.addf %16, %17 : vector<16x16xf32>
    %cst_12 = arith.constant 0.000000e+00 : f32
    %19 = vector.broadcast %cst_12 : f32 to vector<16x16xf32>
    %20 = arith.maximumf %18, %19 : vector<16x16xf32>
    %cst_13 = arith.constant dense<0.000000e+00> : vector<16xf32>
    %21 = vector.multi_reduction <add>, %20, %cst_13 [1] : vector<16x16xf32> to vector<16xf32>
    %22 = vector.shape_cast %21 : vector<16xf32> to vector<16x1xf32>
    %cst_14 = arith.constant 1.000000e+00 : f32
    %23 = vector.broadcast %cst_14 : f32 to vector<16x1xf32>
    %24 = arith.addf %22, %23 : vector<16x1xf32>
    %25 = math.rsqrt %24 : vector<16x1xf32>
    %c0_15 = arith.constant 0 : index
    %c0_16 = arith.constant 0 : index
    %c0_17 = arith.constant 0 : index
    %26 = vector.load %arg5[%c0_15, %c0_16, %c0_17] : memref<1x16x33xf32, #tpu.memory_space<vmem>>, vector<1x16x33xf32>
    %27 = vector.shape_cast %26 : vector<1x16x33xf32> to vector<16x33xf32>
    %28 = vector.broadcast %25 : vector<16x1xf32> to vector<16x33xf32>
    %29 = arith.mulf %28, %27 : vector<16x33xf32>
    %cst_18 = arith.constant dense<0.000000e+00> : vector<16x33xf32>
    %30 = tpu.matmul %20, %29, %cst_18 {dimension_numbers = #tpu.dot_dimension_numbers<[1], [0], [0], [1], [0, 0, 1, 1], [], []>} : vector<16x16xf32>, vector<16x33xf32>, vector<16x33xf32> -> vector<16x33xf32>
    %31 = arith.addf %30, %29 : vector<16x33xf32>
    %32 = vector.broadcast %25 : vector<16x1xf32> to vector<16x33xf32>
    %33 = arith.mulf %32, %31 : vector<16x33xf32>
    %c0_19 = arith.constant 0 : index
    %c0_20 = arith.constant 0 : index
    %34 = vector.load %arg6[%c0_19, %c0_20] : memref<33x8xf32, #tpu.memory_space<vmem>>, vector<33x8xf32>
    %cst_21 = arith.constant dense<0.000000e+00> : vector<16x8xf32>
    %35 = tpu.matmul %33, %34, %cst_21 {dimension_numbers = #tpu.dot_dimension_numbers<[1], [0], [0], [1], [0, 0, 1, 1], [], []>} : vector<16x33xf32>, vector<33x8xf32>, vector<16x8xf32> -> vector<16x8xf32>
    %c0_22 = arith.constant 0 : index
    %c0_23 = arith.constant 0 : index
    %36 = vector.load %arg7[%c0_22, %c0_23] : memref<1x8xf32, #tpu.memory_space<vmem>>, vector<1x8xf32>
    %37 = vector.broadcast %36 : vector<1x8xf32> to vector<16x8xf32>
    %38 = arith.addf %35, %37 : vector<16x8xf32>
    %c0_24 = arith.constant 0 : index
    %c0_25 = arith.constant 0 : index
    %c0_26 = arith.constant 0 : index
    %39 = vector.load %arg8[%c0_24, %c0_25, %c0_26] : memref<1x16x8xf32, #tpu.memory_space<vmem>>, vector<1x16x8xf32>
    %40 = vector.shape_cast %39 : vector<1x16x8xf32> to vector<16x8xf32>
    %41 = vector.shape_cast %38 : vector<16x8xf32> to vector<1x16x8xf32>
    tpu.vector_store %arg8[%c0_24, %c0_25, %c0_26], %41 {strides = array<i32>} : memref<1x16x8xf32, #tpu.memory_space<vmem>>, vector<1x16x8xf32>,
    return
  }
  func.func @transform_0(%arg0: i32) -> (i32, i32, i32) {
    %c0_i32 = arith.constant 0 : i32
    %c0_i32_0 = arith.constant 0 : i32
    %c0_i32_1 = arith.constant 0 : i32
    return %arg0, %c0_i32, %c0_i32_0 : i32, i32, i32
  }
  func.func @transform_1(%arg0: i32) -> (i32, i32) {
    %c0_i32 = arith.constant 0 : i32
    %c0_i32_0 = arith.constant 0 : i32
    %c0_i32_1 = arith.constant 0 : i32
    return %c0_i32, %c0_i32_0 : i32, i32
  }
  func.func @transform_2(%arg0: i32) -> (i32, i32) {
    %c0_i32 = arith.constant 0 : i32
    %c0_i32_0 = arith.constant 0 : i32
    %c0_i32_1 = arith.constant 0 : i32
    return %c0_i32, %c0_i32_0 : i32, i32
  }
  func.func @transform_3(%arg0: i32) -> (i32, i32) {
    %c0_i32 = arith.constant 0 : i32
    %c0_i32_0 = arith.constant 0 : i32
    %c0_i32_1 = arith.constant 0 : i32
    return %c0_i32, %c0_i32_0 : i32, i32
  }
  func.func @transform_4(%arg0: i32) -> (i32, i32, i32) {
    %c0_i32 = arith.constant 0 : i32
    %c0_i32_0 = arith.constant 0 : i32
    %c0_i32_1 = arith.constant 0 : i32
    return %arg0, %c0_i32, %c0_i32_0 : i32, i32, i32
  }
  func.func @transform_5(%arg0: i32) -> (i32, i32) {
    %c0_i32 = arith.constant 0 : i32
    %c0_i32_0 = arith.constant 0 : i32
    %c0_i32_1 = arith.constant 0 : i32
    return %c0_i32, %c0_i32_0 : i32, i32
  }
  func.func @transform_6(%arg0: i32) -> (i32, i32) {
    %c0_i32 = arith.constant 0 : i32
    %c0_i32_0 = arith.constant 0 : i32
    %c0_i32_1 = arith.constant 0 : i32
    return %c0_i32, %c0_i32_0 : i32, i32
  }
  func.func @transform_7(%arg0: i32) -> (i32, i32, i32) {
    %c0_i32 = arith.constant 0 : i32
    %c0_i32_0 = arith.constant 0 : i32
    %c0_i32_1 = arith.constant 0 : i32
    return %arg0, %c0_i32, %c0_i32_0 : i32, i32, i32
  }
}

</mosaic_0001>

<bundles_post_ra>
// kernel: tpu_custom_call.1
= control target key start
LH: loop header
LB: loop body
LE: loop exit
PB: predicated region body
PF: predicated region fallthrough
CT: control target
= control target key end

     0   :  { %s1065_s24 = smov 0   ;;  %s1228_s0 = inlined_call_operand.vmem [shape: f32[2,16,1], index: 0, kind: input, shape index: {}]   ;;  %s1229_s1 = inlined_call_operand.vmem [shape: f32[16,16], index: 1, kind: input, shape index: {}]   ;;  %s1230_s2 = inlined_call_operand.vmem [shape: f32[16,16], index: 2, kind: input, shape index: {}]   ;;  %s1231_s3 = inlined_call_operand.vmem [shape: f32[16,16], index: 3, kind: input, shape index: {}]   ;;  %s1232_s4 = inlined_call_operand.vmem [shape: f32[2,16,33], index: 4, kind: input, shape index: {}]   ;;  %s1233_s5 = inlined_call_operand.vmem [shape: f32[33,8], index: 5, kind: input, shape index: {}]   ;;  %s1234_s6 = inlined_call_operand.vmem [shape: f32[1,8], index: 6, kind: input, shape index: {}]   ;;  %s1235_s7 = inlined_call_operand.vmem [shape: f32[2,16,8], index: 7, kind: output, shape index: {}]  }
   0x1 LB: > { %s884_s25 = sadd.s32 4294967295, %s1016_s24   ;;  %p888_p0 = scmp.ge.s32.totalorder %s1016_s24, 1  ;;  %s1016_s24 = sphi %s1065_s24, %s17_s24  }
   0x2   : > { %p247_p1 = scmp.lt.s32.totalorder %s1016_s24, 3 }
   0x4   : > { %p248_p2 = pnand %p888_p0, %p247_p1 }
   0x5   : > { %p284_p3 = scmp.lt.s32.totalorder (!%p248_p2), %s884_s25, 1  ;;  %v1018_v0 = vmov (!%p248_p2), 0   ;;  %v531_v3 = vld [vmem:[%s1231_s3] sm:$0xff] (!%p248_p2)  ;;  %v532_v4 = vld [vmem:[%s1231_s3 + $0x8] sm:$0xff] (!%p248_p2)  ;;  %v1019_v38 = vmov (!%p248_p2), 683565275  }
   0x6   : > { %251 = sbr.rel (%p248_p2) target bundleno = 1064 (0x428), region = 48  ;;  %997 = vset.pattern.permute.xlu0 (!%p248_p2), %v1018_v0  ;;  %v958_v5 = vpack.c.bf16 (!%p248_p2), %v532_v4, %v531_v3  ;;  %v299_v6 = vld [vmem:[%s1229_s1] sm:$0xff] (!%p248_p2)  ;;  %v300_v9 = vld [vmem:[%s1229_s1 + $0x8] sm:$0xff] (!%p248_p2)  ;;  %v1020_v40 = vmov (!%p248_p2), 2475754826  }
   0x7   : > { %v1021_v44 = vmov (!%p248_p2), 2131351028   ;;  %v1022_v46 = vmov (!%p248_p2), 2102212464   ;;  %v1023_v51 = vmov (!%p248_p2), 920167782  }
   0x8   : > { %959 = vmatprep.subr.bf16.mxu1 (!%p248_p2), %v958_v5  ;;  %v1024_v56 = vmov (!%p248_p2), 1326507024  }
   0x9   : > { %961 = vmatpush3.bf16.msra.mxu1 (!%p248_p2), %v958_v5 }
   0xd   : > { %s1241_s25 = smov (!%p284_p3, %s884_s25), 1 }
   0xe   : > { %s1073_s26 = sshll.u32 %s1241_s25, 4 }
   0xf   : > { %s288_s29 = scalar_lea.vmem %s1228_s0, %s1073_s26  ;;  %s293_s27 = scalar_lea.vmem %s1232_s4, %s1073_s26 }
  0x10   : > { %v301_v1 = vld [vmem:[%s288_s29] sm:$0xff]  ;;  %v302_v2 = vld [vmem:[%s288_s29 + $0x8] sm:$0xff]  ;;  %s298_s15 = scalar_lea.vmem %s1235_s7, %s1073_s26 }
  0x11   : > { %305 = vperm.xlu0 %997, %v301_v1  }
  0x15   : > { %310 = vperm.xlu0 %997, %v302_v2  }
  0x90   : > { %v306_v7 = vpop.permute.xlu0 %305 }
  0x91   : > { %v313_v8 = vsub.f32 %v299_v6, %v306_v7 }
  0x93   : > { %v315_v10 = vand.u32 2147483647, %v313_v8 }
  0x94   : > { %v311_v11 = vpop.permute.xlu0 %310 }
  0x95   : > { %vm317_vm0 = vcmp.gt.f32.partialorder %v315_v10, 360.0  ;;  %v314_v12 = vsub.f32 %v300_v9, %v311_v11 }
  0x96   : > { %v319_v13 = vsel %vm317_vm0, 180.0, %v315_v10 }
  0x97   : > { %v1091_v14 = vmul.f32 0.017453292, %v319_v13  ;;  %v316_v15 = vand.u32 2147483647, %v314_v12 }
  0x99   : > { %v326_v16 = vand.u32 2139095040, %v1091_v14  ;;  %vm318_vm1 = vcmp.gt.f32.partialorder %v316_v15, 360.0  ;;  %v323_v23 = vand.u32 2147483647, %v1091_v14 }
  0x9a   : > { %v320_v17 = vsel %vm318_vm1, 180.0, %v316_v15 }
  0x9b   : > { %v327_v18 = vshrl.u32 %v326_v16, 23  ;;  %v1094_v19 = vmul.f32 0.017453292, %v320_v17  ;;  %v1103_v28 = vand.u32 8388607, %v323_v23 }
  0x9d   : > { %v895_v20 = vadd.s32 4294967169, %v327_v18  ;;  %v426_v21 = vand.u32 2147483647, %v1094_v19  ;;  %v429_v22 = vand.u32 2139095040, %v1094_v19  ;;  %v331_v35 = vor.u32 8388608, %v1103_v28 }
  0x9e   : > { %vm428_vm0 = vcmp.lt.s32.totalorder %v1094_v19, 0 }
  0x9f   : > { %v333_v24 = vadd.s32 1, %v895_v20  ;;  %v430_v25 = vshrl.u32 %v429_v22, 23  ;;  %v433_v26 = vand.u32 8388607, %v426_v21  ;;  %vm1164_vm1 = vcmp.le.f32.partialorder %v426_v21, 0.7853982 }
  0xa1   : > { %vm334_vm2 = vcmp.gt.s32.totalorder %v333_v24, 0  ;;  %v899_v27 = vadd.s32 4294967169, %v430_v25  ;;  %v434_v30 = vor.u32 8388608, %v433_v26 }
  0xa2   : > { %v335_v29 = vsel %vm334_vm2, %v333_v24, 0  ;;  %vm325_vm2 = vcmp.lt.s32.totalorder %v1091_v14, 0 }
  0xa3   : > { %v337_v31 = vand.u32 31, %v335_v29  ;;  %v436_v32 = vadd.s32 1, %v899_v27  ;;  %v1105_v33 = vshrl.u32 %v335_v29, 5  ;;  %v1110_v37 = vshll.u32 %v434_v30, 8 }
  0xa5   : > { %v1107_v34 = vsub.s32 32, %v337_v31  ;;  %vm437_vm3 = vcmp.gt.s32.totalorder %v436_v32, 0  ;;  %v340_v39 = vshll.u32 %v1019_v38, %v337_v31  ;;  %v343_v41 = vshll.u32 %v1020_v40, %v337_v31 }
  0xa6   : > { %v438_v36 = vsel %vm437_vm3, %v436_v32, 0  ;;  %v346_v45 = vshll.u32 %v1021_v44, %v337_v31  ;;  %v349_v47 = vshll.u32 %v1022_v46, %v337_v31  ;;  %v352_v52 = vshll.u32 %v1023_v51, %v337_v31 }
  0xa7   : > { %v439_v42 = vshrl.u32 %v438_v36, 5  ;;  %v440_v43 = vand.u32 31, %v438_v36  ;;  %v341_v48 = vshrl.u32 %v1020_v40, %v1107_v34  ;;  %v344_v49 = vshrl.u32 %v1021_v44, %v1107_v34 }
  0xa8   : > { %v347_v50 = vshrl.u32 %v1022_v46, %v1107_v34  ;;  %v350_v55 = vshrl.u32 %v1023_v51, %v1107_v34  ;;  %v353_v57 = vshrl.u32 %v1024_v56, %v1107_v34  ;;  %vm355_vm8 = vcmp.lt.s32.totalorder %v1105_v33, 1 }
  0xa9   : > { %v441_v53 = vsub.s32 32, %v440_v43  ;;  %v443_v54 = vshll.u32 %v1019_v38, %v440_v43  ;;  %v446_v58 = vshll.u32 %v1020_v40, %v440_v43  ;;  %v449_v59 = vshll.u32 %v1021_v44, %v440_v43 }
  0xaa   : > { %v452_v60 = vshll.u32 %v1022_v46, %v440_v43  ;;  %v455_v61 = vshll.u32 %v1023_v51, %v440_v43  ;;  %vm458_vm4 = vcmp.lt.s32.totalorder %v439_v42, 1  ;;  %vm459_vm5 = vcmp.lt.s32.totalorder %v439_v42, 2 }
  0xab   : > { %v444_v62 = vshrl.u32 %v1020_v40, %v441_v53  ;;  %v447_v63 = vshrl.u32 %v1021_v44, %v441_v53  ;;  %v450_v0 = vshrl.u32 %v1022_v46, %v441_v53  ;;  %v442_v1 = vshrl.u32 %v1019_v38, %v441_v53 }
  0xac   : > { %v453_v2 = vshrl.u32 %v1023_v51, %v441_v53  ;;  %v456_v3 = vshrl.u32 %v1024_v56, %v441_v53  ;;  %vm460_vm6 = vcmp.lt.s32.totalorder %v439_v42, 3  ;;  %vm461_vm7 = vcmp.lt.s32.totalorder %v439_v42, 4 }
  0xad   : > { %v445_v4 = vor.u32 %v444_v62, %v443_v54  ;;  %v448_v5 = vor.u32 %v447_v63, %v446_v58  ;;  %v451_v6 = vor.u32 %v450_v0, %v449_v59  ;;  %v342_v9 = vor.u32 %v341_v48, %v340_v39 }
  0xae   : > { %v454_v7 = vor.u32 %v453_v2, %v452_v60  ;;  %v457_v8 = vor.u32 %v456_v3, %v455_v61  ;;  %v345_v13 = vor.u32 %v344_v49, %v343_v41  ;;  %v348_v18 = vor.u32 %v347_v50, %v346_v45 }
  0xaf   : > { %v463_v10 = vsel %vm461_vm7, %v451_v6, 2102212464  ;;  %v466_v11 = vsel %vm458_vm4, %v445_v4, %v448_v5  ;;  %v470_v12 = vsel %vm458_vm4, %v448_v5, %v451_v6  ;;  %v462_v15 = vsel %vm458_vm4, %v442_v1, %v445_v4 }
  0xb0   : > { %v467_v16 = vsel %vm461_vm7, %v454_v7, 920167782  ;;  %v471_v17 = vsel %vm461_vm7, %v457_v8, 1326507024  ;;  %v464_v20 = vsel %vm460_vm6, %v448_v5, %v463_v10  ;;  %v351_v25 = vor.u32 %v350_v55, %v349_v47 }
  0xb1   : > { %v468_v22 = vsel %vm460_vm6, %v451_v6, %v467_v16  ;;  %v472_v24 = vsel %vm460_vm6, %v454_v7, %v471_v17  ;;  %v354_v28 = vor.u32 %v353_v57, %v352_v52  ;;  %v465_v36 = vsel %vm459_vm5, %v462_v15, %v464_v20 }
  0xb2   : > { %v469_v26 = vsel %vm459_vm5, %v466_v11, %v468_v22  ;;  %v473_v27 = vsel %vm459_vm5, %v470_v12, %v472_v24  ;;  %vm358_vm9 = vcmp.lt.s32.totalorder %v1105_v33, 4  ;;  %v371_v39 = vshll.u32 %v331_v35, 8 }
  0xb3   : > { %v1126_v29 = vmul.u32.u64.low %v1110_v37, %v473_v27  ;;  %v1127_v30 = vmul.u32.u64.high %v1110_v37, %v473_v27, %v1126_v29  ;;  %v1130_v31 = vmul.u32.u64.low %v1110_v37, %v469_v26  ;;  %v1131_v32 = vmul.u32.u64.high %v1110_v37, %v469_v26, %v1130_v31 }
  0xb4   : > { %vm357_vm10 = vcmp.lt.s32.totalorder %v1105_v33, 3  ;;  %v360_v40 = vsel %vm358_vm9, %v348_v18, 2102212464  ;;  %v363_v41 = vsel %vm355_vm8, %v342_v9, %v345_v13  ;;  %v364_v43 = vsel %vm358_vm9, %v351_v25, 920167782 }
  0xb5   : > { %v339_v44 = vshrl.u32 %v1019_v38, %v1107_v34  ;;  %v365_v45 = vsel %vm357_vm10, %v348_v18, %v364_v43  ;;  %v367_v42 = vsel %vm355_vm8, %v345_v13, %v348_v18  ;;  %v368_v46 = vsel %vm358_vm9, %v354_v28, 1326507024 }
  0xb6   : > { %v481_v47 = vmul.u32 %v1110_v37, %v465_v36  ;;  %vm483_vm11 = vc.u32 %v1127_v30, %v1130_v31  ;;  %v484_v35 = vadd.s32 1, %v1131_v32  ;;  %vm356_vm12 = vcmp.lt.s32.totalorder %v1105_v33, 2 }
  0xb7   : > { %v359_v48 = vsel %vm355_vm8, %v339_v44, %v342_v9  ;;  %v361_v49 = vsel %vm357_vm10, %v345_v13, %v360_v40  ;;  %v366_v50 = vsel %vm356_vm12, %v363_v41, %v365_v45  ;;  %v369_v51 = vsel %vm357_vm10, %v351_v25, %v368_v46 }
  0xb8   : > { %v485_v34 = vsel %vm483_vm11, %v484_v35, %v1131_v32  ;;  %v370_v38 = vsel %vm356_vm12, %v367_v42, %v369_v51  ;;  %v1150_v52 = vmul.u32.u64.low %v371_v39, %v366_v50  ;;  %v1151_v53 = vmul.u32.u64.high %v371_v39, %v366_v50, %v1150_v52 }
  0xb9   : > { %v486_v54 = vadd.s32 %v485_v34, %v481_v47  ;;  %v1153_v37 = vmul.u32.u64.low %v371_v39, %v370_v38  ;;  %v1154_v55 = vmul.u32.u64.high %v371_v39, %v370_v38, %v1153_v37  ;;  %v362_v56 = vsel %vm356_vm12, %v359_v48, %v361_v49 }
  0xba   : > { %v381_v58 = vadd.s32 1, %v1151_v53  ;;  %v378_v33 = vmul.u32 %v371_v39, %v362_v56  ;;  %v482_v11 = vadd.s32 %v1130_v31, %v1127_v30  ;;  %vm1174_vm3 = vcmp.le.f32.partialorder %v323_v23, 0.7853982 }
  0xbb   : > { %v487_v57 = vadd.s32 536870912, %v486_v54  ;;  %vm380_vm13 = vc.u32 %v1154_v55, %v1150_v52  ;;  %v379_v27 = vadd.s32 %v1150_v52, %v1154_v55  ;;  %vm518_vm8 = vweird.f32 %v1094_v19 }
  0xbc   : > { %v382_v60 = vsel %vm380_vm13, %v381_v58, %v1151_v53  ;;  %vm415_vm11 = vweird.f32 %v1091_v14  ;;  %vm535_vm12 = vcmask 130048   ;;  %vm735_vm13 = vcmask 1040384  }
  0xbd   : > { %v488_v59 = vshrl.u32 %v487_v57, 30  ;;  %v383_v62 = vadd.s32 %v382_v60, %v378_v33 }
  0xbf   : > { %v489_v61 = vshll.u32 %v488_v59, 30  ;;  %v384_v0 = vadd.s32 536870912, %v383_v62  ;;  %v512_v49 = vsub.s32 4, %v488_v59 }
  0xc1   : > { %v490_v63 = vsub.s32 %v486_v54, %v489_v61  ;;  %v385_v2 = vshrl.u32 %v384_v0, 30  ;;  %v513_v34 = vsel %vm428_vm0, %v512_v49, %v488_v59 }
  0xc2   : > { %v515_v54 = vsel %vm1164_vm1, 0, %v513_v34 }
  0xc3   : > { %v492_v1 = vsub.s32 0, %v490_v63  ;;  %v386_v4 = vshll.u32 %v385_v2, 30  ;;  %v409_v52 = vsub.s32 4, %v385_v2  ;;  %v519_v55 = vand.u32 3, %v515_v54 }
  0xc5   : > { %v900_v3 = vmin.u32 %v492_v1, %v490_v63  ;;  %v387_v6 = vsub.s32 %v383_v62, %v386_v4  ;;  %v410_v37 = vsel %vm325_vm2, %v409_v52, %v385_v2  ;;  %vm521_vm4 = vcmp.eq.s32.totalorder %v519_v55, 0 }
  0xc6   : > { %v412_v23 = vsel %vm1174_vm3, 0, %v410_v37  ;;  %vm524_vm5 = vcmp.eq.s32.totalorder %v519_v55, 2  ;;  %vm520_vm6 = vcmp.lt.s32.totalorder %v519_v55, 2 }
  0xc7   : > { %v494_v5 = vclz %v900_v3  ;;  %v389_v8 = vsub.s32 0, %v387_v6  ;;  %v416_v61 = vand.u32 3, %v412_v23 }
  0xc9   : > { %v901_v7 = vadd.s32 4294967294, %v494_v5  ;;  %v896_v9 = vmin.u32 %v389_v8, %v387_v6  ;;  %vm421_vm7 = vcmp.eq.s32.totalorder %v416_v61, 2  ;;  %vm418_vm9 = vcmp.eq.s32.totalorder %v416_v61, 0 }
  0xca   : > { %vm417_vm10 = vcmp.lt.s32.totalorder %v416_v61, 2 }
  0xcb   : > { %vm902_vm14 = vcmp.lt.s32.totalorder %v901_v7, 0  ;;  %v391_v15 = vclz %v896_v9 }
  0xcc   : > { %v497_v10 = vsel %vm902_vm14, 0, %v901_v7  ;;  %vm728_vm14 = vcmask 269312  }
  0xcd   : > { %v498_v12 = vsub.s32 32, %v497_v10  ;;  %v502_v13 = vsub.s32 4294967266, %v497_v10  ;;  %v499_v16 = vshll.u32 %v490_v63, %v497_v10  ;;  %v897_v20 = vadd.s32 4294967294, %v391_v15  ;;  %v533_v10 = vld [vmem:[%s1230_s2] sm:$0xff] }
  0xcf   : > { %v500_v17 = vshrl.u32 %v482_v11, %v498_v12  ;;  %v503_v18 = vadd.s32 127, %v502_v13  ;;  %vm898_vm15 = vcmp.lt.s32.totalorder %v897_v20, 0 }
  0xd0   : > { %v394_v25 = vsel %vm898_vm15, 0, %v897_v20  ;;  %v716_v20 = vld [vmem:[%s1233_s5] sm:$0xff]  ;;  %vm814_vm15 = vcmask 64512  }
  0xd1   : > { %v501_v22 = vor.u32 %v500_v17, %v499_v16  ;;  %v504_v24 = vshll.u32 %v503_v18, 23  ;;  %v395_v28 = vsub.s32 32, %v394_v25  ;;  %v399_v29 = vsub.s32 4294967266, %v394_v25 }
  0xd2   : > { %v396_v30 = vshll.u32 %v387_v6, %v394_v25 }
  0xd3   : > { %v505_v26 = vor.u32 4788187, %v504_v24  ;;  %v508_v36 = vcvt.s32.f32 %v501_v22  ;;  %v397_v39 = vshrl.u32 %v379_v27, %v395_v28  ;;  %v400_v31 = vadd.s32 127, %v399_v29  ;;  %v717_v22 = vld [vmem:[%s1233_s5 + $0x8] sm:$0xff] }
  0xd4   : > { %v966_v24 = vpack.c.bf16 %v717_v22, %v716_v20 }
  0xd5   : > { %v506_v32 = vand.u32 2147483647, %v505_v26  ;;  %v398_v41 = vor.u32 %v397_v39, %v396_v30  ;;  %v401_v43 = vshll.u32 %v400_v31, 23 }
  0xd6   : > { %967 = vmatprep.subr.bf16.mxu0 %v966_v24 }
  0xd7   : > { %v509_v40 = vmul.f32 %v508_v36, %v506_v32  ;;  %v402_v45 = vor.u32 4788187, %v401_v43  ;;  %v405_v48 = vcvt.s32.f32 %v398_v41  ;;  %969 = vmatpush3.bf16.msra.mxu0 %v966_v24  ;;  %v629_v32 = vld [vmem:[%s293_s27] sm:$0xff]  ;;  %v630_v36 = vld [vmem:[%s293_s27 + $0x8] sm:$0xff]  ;;  %v718_v41 = vld [vmem:[%s1233_s5 + $0x10] sm:$0xff] }
  0xd8   : > { %v719_v43 = vld [vmem:[%s1233_s5 + $0x18] sm:$0xff] }
  0xd9   : > { %v510_v44 = vxor.u32 2147483648, %v509_v40  ;;  %v403_v35 = vand.u32 2147483647, %v402_v45  ;;  %v720_v45 = vld [vmem:[%s1233_s5 + $0x20] sm:$0x1] }
  0xdb   : > { %v511_v46 = vsel %vm428_vm0, %v510_v44, %v509_v40  ;;  %v406_v50 = vmul.f32 %v405_v48, %v403_v35  ;;  %v970_v44 = vpack.c.bf16 %v719_v43, %v718_v41 }
  0xdc   : > { %v514_v47 = vsel %vm1164_vm1, %v1094_v19, %v511_v46  ;;  %v534_v19 = vld [vmem:[%s1230_s2 + $0x8] sm:$0xff] }
  0xdd   : > { %998 = vcosq.f32 %v514_v47  ;;  %v407_v51 = vxor.u32 2147483648, %v406_v50  ;;  %971 = vmatprep.subr.bf16.mxu0 %v970_v44 }
  0xde   : > { %1000 = vsinq.f32 %v514_v47  ;;  %973 = vmatpush3.bf16.msra.mxu0 %v970_v44 }
  0xdf   : > { %v408_v38 = vsel %vm325_vm2, %v407_v51, %v406_v50  ;;  %953 = vmatprep.subr.msk.mxu0 %vm735_vm13, %v720_v45  ;;  %v907_v50 = vld [vmem:[%s1234_s6] ss:$0 sm:$0xff] }
  0xe0   : > { %v411_v53 = vsel %vm1174_vm3, %v1091_v14, %v408_v38 }
  0xe1   : > { %1002 = vcosq.f32 %v411_v53 }
  0xe2   : > { %1004 = vsinq.f32 %v411_v53  ;;  %954 = vmatpush3.msk.msra.mxu0 %vm735_vm13, %v720_v45 }
  0xe7   : > { %v999_v56 = vpop.eup %998 }
  0xe8   : > { %v1001_v57 = vpop.eup %1000  ;;  %v525_v58 = vxor.u32 2147483648, %v999_v56 }
  0xe9   : > { %v522_v59 = vxor.u32 2147483648, %v1001_v57 }
  0xea   : > { %v526_v60 = vsel %vm524_vm5, %v525_v58, %v1001_v57 }
  0xeb   : > { %v523_v33 = vsel %vm521_vm4, %v999_v56, %v522_v59  ;;  %v1003_v62 = vpop.eup %1002 }
  0xec   : > { %v527_v63 = vsel %vm520_vm6, %v523_v33, %v526_v60  ;;  %v1005_v0 = vpop.eup %1004  ;;  %v422_v1 = vxor.u32 2147483648, %v1003_v62 }
  0xed   : > { %v419_v3 = vxor.u32 2147483648, %v1005_v0  ;;  %v528_v4 = vsel %vm518_vm8, nan, %v527_v63 }
  0xee   : > { %v423_v2 = vsel %vm421_vm7, %v422_v1, %v1005_v0  ;;  %v530_v8 = vmax.f32 %v528_v4, 0.0 }
  0xef   : > { %v420_v5 = vsel %vm418_vm9, %v1003_v62, %v419_v3 }
  0xf0   : > { %v424_v6 = vsel %vm417_vm10, %v420_v5, %v423_v2 }
  0xf1   : > { %v425_v7 = vsel %vm415_vm11, nan, %v424_v6 }
  0xf2   : > { %v529_v9 = vmax.f32 %v425_v7, 0.0 }
  0xf4   : > { %935 = vmatprep.mubr.msk.f32.mxu1 %vm535_vm12, %v529_v9 }
  0xf5   : > { %936 = vmatmul.mubr.msk.f32.vlgmr.msra.gmra.mrb[0].mxu1 %vm535_vm12, %v530_v8 }
 0x1c8   : > { %v937_v11 = vpop.f32.mrb[0].mxu1 }
 0x1c9   : > { %v608_v12 = vpop.f32.mrb[1].mxu1  ;;  %v614_v14 = vadd.f32 %v937_v11, %v534_v19 }
 0x1ca   : > { %v609_v13 = vadd.f32 %v608_v12, %v533_v10 }
 0x1cb   : > { %v618_v16 = vmax.f32 %v614_v14, 0.0 }
 0x1cc   : > { %v617_v15 = vmax.f32 %v609_v13, 0.0 }
 0x1cd   : > { %v622_v18 = vsel %vm535_vm12, %v618_v16, 0.0 }
 0x1ce   : > { %942 = vmatprep.mubr.msk.f32.mxu1 %vm535_vm12, %v617_v15  ;;  %v619_v17 = vsel %vm535_vm12, %v617_v15, 0.0 }
 0x1cf   : > { %620 = vadd.xlane.f32.xlu1 %v619_v17 }
 0x1d3   : > { %623 = vadd.xlane.f32.xlu1 %v622_v18 }
 0x25c   : > { %v621_v25 = vpop.xlane.xlu1 %620 }
 0x25d   : > { %v625_v26 = vadd.f32 1.0, %v621_v25 }
 0x25f   : > { %1006 = vrsqrt.f32 %v625_v26 }
 0x260   : > { %v624_v27 = vpop.xlane.xlu1 %623 }
 0x261   : > { %v626_v28 = vadd.f32 1.0, %v624_v27 }
 0x263   : > { %1008 = vrsqrt.f32 %v626_v28 }
 0x269   : > { %v1007_v29 = vpop.eup %1006 }
 0x26a   : > { %v631_v30 = vmul.f32 %v1007_v29, %v629_v32 }
 0x26d   : > { %v1009_v39 = vpop.eup %1008 }
 0x26e   : > { %v632_v31 = vmul.f32 %v1009_v39, %v630_v36 }
 0x270   : > { %v962_v40 = vpack.c.bf16 %v632_v31, %v631_v30 }
 0x272   : > { %963 = vmatprep.subr.bf16.mxu1 %v962_v40 }
 0x273   : > { %965 = vmatpush3.bf16.msra.mxu1 %v962_v40 }
 0x276   : > { %943 = vmatmul.mubr.msk.f32.vlgmr.msra.gmra.mrb[2].mxu1 %vm535_vm12, %v618_v16 }
 0x349   : > { %v944_v42 = vpop.f32.mrb[2].mxu1 }
 0x34a   : > { %v711_v46 = vadd.f32 %v944_v42, %v632_v31  ;;  %v705_v47 = vpop.f32.mrb[3].mxu1 }
 0x34b   : > { %v706_v35 = vadd.f32 %v705_v47, %v631_v30 }
 0x34c   : > { %v715_v49 = vmul.f32 %v1009_v39, %v711_v46 }
 0x34d   : > { %v714_v48 = vmul.f32 %v1007_v29, %v706_v35 }
 0x34f   : > { %955 = vmatprep.mubr.msk.f32.mxu0 %vm728_vm14, %v714_v48 }
 0x350   : > { %956 = vmatmul.mubr.msk.f32.vlgmr.msra.gmra.mrb[0].mxu0 %vm728_vm14, %v715_v49 }
 0x423   : > { %v957_v51 = vpop.f32.mrb[0].mxu0 }
 0x424   : > { %v811_v34 = vadd.f32 %v957_v51, %v907_v50  ;;  %v805_v21 = vpop.f32.mrb[1].mxu0 }
 0x425   : > { %v806_v38 = vadd.f32 %v907_v50, %v805_v21 }
 0x426   : > { %816 = vst.msk [vmem:[%s298_s15 + $0x8] sm:$0xff] %vm814_vm15, %v811_v34 }
 0x427   : > { %815 = vst.msk [vmem:[%s298_s15] sm:$0xff] %vm814_vm15, %v806_v38 }
 0x428 PF: > { %s17_s24 = sadd.s32 1, %s1016_s24  }
 0x429   : > { %p14_p4 = scmp.ge.s32.totalorder %s17_s24, 4  }
 0x42b   :  { %16 = sbr.rel (!%p14_p4) target bundleno = 1 (0x1), region = 81 }

</bundles_post_ra>
